<compile_context>
chip_gen: v7x
topology: tpu7x:2x2x1
jax: 0.10.0
libtpu: 0.0.40
codegen_flags: <defaults>
</compile_context>

<pallas_src>
import math

import jax
import jax.numpy as jnp
from jax.experimental import pallas as pl
from jax.experimental.pallas import tpu as pltpu

_MiB = 1024 * 1024


def _round_up(x, m):
    return ((x + m - 1) // m) * m


def _nbytes(shape, dtype):
    return math.prod(shape) * jnp.dtype(dtype).itemsize


def _vmem_limit(footprint_bytes):
    """Footprint + headroom, clamped below physical VMEM (v7x: 64 MiB)."""
    try:
        phys = int(pltpu.get_tpu_info().vmem_capacity_bytes)
    except Exception:
        phys = 64 * _MiB                     # conservative (v7x per-core)
    cap = (phys * 7) // 8                    # leave room for Mosaic scratch
    return int(min(max(32 * _MiB, footprint_bytes + 8 * _MiB), cap))


# ------------------------- Pass 1: LSTM recurrence kernel -------------------------

def _make_recurrence_kernel(num_layers):
    """grid=(T,). Refs: x[1,B,E], h_init[L,B,H], c_init[L,B,H],
    (wih[in,4H], whh[H,4H], b[1,4H]) * L  ->  h_top[1,B,H], h_state, c_state.
    h_state/c_state have constant block index -> resident accumulators that
    carry the recurrent state across the sequential grid."""

    def kernel(*refs):
        x_ref, h_init_ref, c_init_ref = refs[0], refs[1], refs[2]
        layer_refs = refs[3:3 + 3 * num_layers]
        h_top_ref = refs[3 + 3 * num_layers]
        h_ref = refs[4 + 3 * num_layers]
        c_ref = refs[5 + 3 * num_layers]

        t = pl.program_id(0)
        H = h_ref.shape[-1]              # padded hidden size (x128)
        cdt = x_ref.dtype                # matmul input dtype (bf16)

        # Initialize the resident recurrent state once from the aliased inputs.
        @pl.when(t == 0)
        def _():
            h_ref[...] = h_init_ref[...]
            c_ref[...] = c_init_ref[...]

        layer_in = x_ref[0]              # [B_pad, E_pad], matmul dtype
        for l in range(num_layers):
            wih_ref = layer_refs[3 * l]
            whh_ref = layer_refs[3 * l + 1]
            b_ref = layer_refs[3 * l + 2]
            # Two accumulating MXU dots (no [x, h] concat copy), f32 accumulate.
            g = (jnp.dot(layer_in, wih_ref[...],
                         preferred_element_type=jnp.float32)
                 + jnp.dot(h_ref[l].astype(cdt), whh_ref[...],
                           preferred_element_type=jnp.float32)
                 + b_ref[...])
            # PyTorch gate order i, f, g, o; slices are 128-lane aligned.
            i = jax.nn.sigmoid(g[:, 0 * H:1 * H])
            f = jax.nn.sigmoid(g[:, 1 * H:2 * H])
            gg = jnp.tanh(g[:, 2 * H:3 * H])
            o = jax.nn.sigmoid(g[:, 3 * H:4 * H])
            c_new = f * c_ref[l] + i * gg
            h_new = o * jnp.tanh(c_new)
            h_ref[l] = h_new
            c_ref[l] = c_new
            # Inter-layer dropout: eval mode -> identity.
            layer_in = h_new.astype(cdt)
        h_top_ref[0] = layer_in          # top-layer hidden for the projection pass

    return kernel


# ------------------------- Pass 2: batched vocab projection -------------------------

def _proj_kernel(h_ref, w_ref, b_ref, out_ref):
    out_ref[...] = (jnp.dot(h_ref[...], w_ref[...],
                            preferred_element_type=jnp.float32)
                    + b_ref[...]).astype(out_ref.dtype)


# ------------------------- One-time parameter preparation -------------------------

def prepare_decoder_params(params, num_layers, v_tile=2048, use_bf16=True):
    """Done ONCE, outside the decode loop:
      - pad E / H to multiples of 128 (per-gate for the 4H axis so i/f/g/o
        slices stay lane-aligned); pad V up to a multiple of the vocab tile,
      - transpose weights to [in, out]; keep W_ih / W_hh separate,
      - combine b_ih + b_hh,
      - cast weights + embedding to bfloat16 (biases stay f32).
    Padded lanes are exactly zero, which keeps padded state exactly zero."""
    emb = params["embedding"]
    V, E = emb.shape
    H = params["w_hh0"].shape[1]
    E_pad, H_pad = _round_up(E, 128), _round_up(H, 128)

    v_tile = _round_up(v_tile, 128)
    V_pad128 = _round_up(V, 128)
    if V_pad128 <= v_tile:
        tv = V_pad = V_pad128
    else:
        tv = v_tile
        V_pad = _round_up(V_pad128, tv)          # always divisible by tv

    wdt = jnp.bfloat16 if use_bf16 else jnp.float32

    def pad_gates_t(w, in_dim, in_pad):
        # torch layout [4H, in] -> padded, transposed [in_pad, 4*H_pad]
        w4 = w.reshape(4, H, in_dim)
        w4p = jnp.zeros((4, H_pad, in_pad), jnp.float32).at[:, :H, :in_dim].set(w4)
        return jnp.transpose(w4p, (2, 0, 1)).reshape(in_pad, 4 * H_pad).astype(wdt)

    def pad_gate_bias(b):
        b4 = b.reshape(4, H)
        b4p = jnp.zeros((4, H_pad), jnp.float32).at[:, :H].set(b4)
        return b4p.reshape(1, 4 * H_pad)

    w_ih, w_hh, b_cat = [], [], []
    for l in range(num_layers):
        in_dim = E if l == 0 else H
        in_pad = E_pad if l == 0 else H_pad
        w_ih.append(pad_gates_t(params[f"w_ih{l}"], in_dim, in_pad))
        w_hh.append(pad_gates_t(params[f"w_hh{l}"], H, H_pad))
        b_cat.append(pad_gate_bias(params[f"b_ih{l}"] + params[f"b_hh{l}"]))

    wout = jnp.zeros((H_pad, V_pad), jnp.float32).at[:H, :V].set(
        params["w_out"].T).astype(wdt)
    bout = jnp.zeros((1, V_pad), jnp.float32).at[0, :V].set(params["b_out"])
    emb_pad = jnp.zeros((V, E_pad), jnp.float32).at[:, :E].set(emb).astype(wdt)

    return {
        "embedding": emb_pad,
        "w_ih": w_ih, "w_hh": w_hh, "b": b_cat,
        "wout": wout, "bout": bout,
        "num_layers": num_layers,
        "vocab_size": V, "hidden_size": H, "emb_dim": E,
        "V_pad": V_pad, "H_pad": H_pad, "E_pad": E_pad, "v_tile": tv,
    }


# ------------------------- Fused decode (core) -------------------------

def _decode_tokens(prepared, tokens_tb, h, c, logits_dtype=jnp.float32):
    """Run T teacher-forced decode steps: one sequential recurrence pallas_call
    followed by one batched/parallel projection pallas_call.

    tokens_tb : int32 [T, B]
    h, c      : float32 [L, B, H]  (unpadded, as in the PyTorch module)
    returns   : (logits [T, B, V], h_new [L, B, H], c_new [L, B, H])
    """
    T, B = tokens_tb.shape
    L = h.shape[0]
    H, V = prepared["hidden_size"], prepared["vocab_size"]
    H_pad, E_pad = prepared["H_pad"], prepared["E_pad"]
    V_pad, tv = prepared["V_pad"], prepared["v_tile"]
    num_layers = prepared["num_layers"]
    wdt = prepared["w_ih"][0].dtype
    B_pad = _round_up(B, 8)

    # Pad the recurrent state; padded lanes stay exactly zero through the
    # recurrence because padded weight rows/cols and biases are zero.
    h_pad = jnp.zeros((L, B_pad, H_pad), jnp.float32).at[:, :B, :H].set(h)
    c_pad = jnp.zeros((L, B_pad, H_pad), jnp.float32).at[:, :B, :H].set(c)
    if B_pad != B:
        tokens_tb = jnp.pad(tokens_tb, ((0, 0), (0, B_pad - B)))

    # One embedding gather for ALL T steps (no per-token gather op).
    embedded = jnp.take(prepared["embedding"], tokens_tb, axis=0)  # [T,B_pad,E_pad]

    # ---------- Pass 1: sequential LSTM recurrence, grid=(T,) ----------
    resident = dict(pipeline_mode=pl.Buffered(1))   # single-buffer constant blocks
    in_specs = [
        pl.BlockSpec((1, B_pad, E_pad), lambda t: (t, 0, 0)),            # per-step x
        pl.BlockSpec((L, B_pad, H_pad), lambda t: (0, 0, 0), **resident),  # h_init
        pl.BlockSpec((L, B_pad, H_pad), lambda t: (0, 0, 0), **resident),  # c_init
    ]
    args = [embedded, h_pad, c_pad]
    for l in range(num_layers):
        wih, whh, b = prepared["w_ih"][l], prepared["w_hh"][l], prepared["b"][l]
        in_specs += [
            pl.BlockSpec(wih.shape, lambda t: (0, 0), **resident),
            pl.BlockSpec(whh.shape, lambda t: (0, 0), **resident),
            pl.BlockSpec(b.shape, lambda t: (0, 0), **resident),
        ]
        args += [wih, whh, b]

    out_shape = (
        jax.ShapeDtypeStruct((T, B_pad, H_pad), wdt),          # h_top per step
        jax.ShapeDtypeStruct((L, B_pad, H_pad), jnp.float32),  # h_final
        jax.ShapeDtypeStruct((L, B_pad, H_pad), jnp.float32),  # c_final
    )
    out_specs = (
        pl.BlockSpec((1, B_pad, H_pad), lambda t: (t, 0, 0)),
        pl.BlockSpec((L, B_pad, H_pad), lambda t: (0, 0, 0)),  # resident state
        pl.BlockSpec((L, B_pad, H_pad), lambda t: (0, 0, 0)),
    )

    rec_footprint = (
        sum(_nbytes(a.shape, a.dtype) for a in args[3:])       # resident weights (x1)
        + 4 * _nbytes((L, B_pad, H_pad), jnp.float32)          # state in + out
        + 2 * _nbytes((1, B_pad, E_pad), wdt)                  # x (double-buffered)
        + 2 * _nbytes((1, B_pad, H_pad), wdt)                  # h_top (double-buffered)
    )

    h_top, h_new, c_new = pl.pallas_call(
        _make_recurrence_kernel(num_layers),
        grid=(T,),
        in_specs=in_specs,
        out_specs=out_specs,
        out_shape=out_shape,
        # In-place recurrent state update (h_init -> h_state, c_init -> c_state).
        input_output_aliases={1: 1, 2: 2},
        compiler_params=pltpu.CompilerParams(
            dimension_semantics=("arbitrary",),     # state carries over t
            vmem_limit_bytes=_vmem_limit(rec_footprint),
        ),
    )(*args)

    # ---------- Pass 2: batched vocab projection [T*B_pad, H_pad] x [H_pad, V_pad] ----------
    M = T * B_pad
    tm = min(_round_up(M, 8), 256)
    M_pad = _round_up(M, tm)
    h_flat = h_top.reshape(M, H_pad)
    if M_pad != M:
        h_flat = jnp.pad(h_flat, ((0, M_pad - M), (0, 0)))
    nm, nvt = M_pad // tm, V_pad // tv

    proj_footprint = (
        2 * _nbytes((tm, H_pad), wdt)
        + 2 * _nbytes((H_pad, tv), wdt)
        + 2 * _nbytes((1, tv), jnp.float32)
        + 2 * _nbytes((tm, tv), logits_dtype)
    )

    logits_flat = pl.pallas_call(
        _proj_kernel,
        grid=(nm, nvt),
        in_specs=[
            pl.BlockSpec((tm, H_pad), lambda m, v: (m, 0)),
            pl.BlockSpec((H_pad, tv), lambda m, v: (0, v)),
            pl.BlockSpec((1, tv), lambda m, v: (0, v)),
        ],
        out_specs=pl.BlockSpec((tm, tv), lambda m, v: (m, v)),
        out_shape=jax.ShapeDtypeStruct((M_pad, V_pad), logits_dtype),
        compiler_params=pltpu.CompilerParams(
            # Embarrassingly parallel: lets v7x's two TensorCores split tiles.
            dimension_semantics=("parallel", "parallel"),
            vmem_limit_bytes=_vmem_limit(proj_footprint),
        ),
    )(h_flat, prepared["wout"], prepared["bout"])
    # TODO(synk): for greedy/beam decode, fuse argmax/top-k here so full logits
    # never hit HBM (or emit bf16 logits) to cut the dominant HBM write.

    logits = logits_flat[:M].reshape(T, B_pad, V_pad)[:, :B, :V]
    return logits, h_new[:, :B, :H], c_new[:, :B, :H]


# ------------------------- Public wrappers -------------------------

def decoder_forward(prepared, input_step, hidden):
    """Mirrors Decoder.forward(input_step, hidden) with rnn_type='lstm',
    attention=False (eval mode).

    input_step : int32 [B, 1]
    hidden     : (h, c), each float32 [num_layers, B, hidden_size]
    returns    : (logits [B, vocab_size], (h_new, c_new), None)
    """
    h, c = hidden
    tokens_tb = input_step[:, 0][None, :]          # [1, B]
    logits_t, h_new, c_new = _decode_tokens(prepared, tokens_tb, h, c)
    return logits_t[0], (h_new, c_new), None       # attention=False -> None


def decoder_forward_fused(prepared, tokens_bt, hidden):
    """T teacher-forced decode steps: one recurrence call (weights resident)
    plus one batched projection call.

    tokens_bt : int32 [B, T]
    returns   : (logits [T, B, vocab_size], (h_final, c_final), None)
    """
    h, c = hidden
    logits_t, h_new, c_new = _decode_tokens(prepared, tokens_bt.T, h, c)
    return logits_t, (h_new, c_new), None


# ------------------------- Pure-JAX reference (verification) -------------------------

def _reference_step(params, token_ids, h, c, num_layers=2):
    """One decode step in f32, with weights and matmul inputs rounded to bf16
    to match the kernel's mixed-precision scheme."""
    q = lambda a: a.astype(jnp.bfloat16).astype(jnp.float32)
    H = h.shape[-1]
    x = q(params["embedding"][token_ids])
    hs, cs = [], []
    layer_in = x
    for l in range(num_layers):
        wih, whh = params[f"w_ih{l}"], params[f"w_hh{l}"]
        b = params[f"b_ih{l}"] + params[f"b_hh{l}"]
        g = q(layer_in) @ q(wih).T + q(h[l]) @ q(whh).T + b
        i = jax.nn.sigmoid(g[:, 0 * H:1 * H])
        f = jax.nn.sigmoid(g[:, 1 * H:2 * H])
        gg = jnp.tanh(g[:, 2 * H:3 * H])
        o = jax.nn.sigmoid(g[:, 3 * H:4 * H])
        c_new = f * c[l] + i * gg
        h_new = o * jnp.tanh(c_new)
        hs.append(h_new)
        cs.append(c_new)
        layer_in = h_new
    logits = q(layer_in) @ q(params["w_out"]).T + params["b_out"]
    return logits, jnp.stack(hs), jnp.stack(cs)


# ------------------------- Main -------------------------

if __name__ == "__main__":
    VOCAB = 64      # vocab_size
    EMB = 32        # embedding_dim
    HID = 32        # hidden_size
    LAYERS = 2      # num_layers
    B = 8           # batch
    T = 4           # fused decode steps for the multi-step test

    key = jax.random.PRNGKey(0)
    ks = jax.random.split(key, 16)
    scale = 1.0 / jnp.sqrt(HID)

    params = {
        "embedding": jax.random.normal(ks[0], (VOCAB, EMB), jnp.float32),
        # PyTorch layouts: weight_ih_l{k} [4H, in], weight_hh_l{k} [4H, H]
        "w_ih0": jax.random.uniform(ks[1], (4 * HID, EMB), jnp.float32, -scale, scale),
        "w_hh0": jax.random.uniform(ks[2], (4 * HID, HID), jnp.float32, -scale, scale),
        "b_ih0": jax.random.uniform(ks[3], (4 * HID,), jnp.float32, -scale, scale),
        "b_hh0": jax.random.uniform(ks[4], (4 * HID,), jnp.float32, -scale, scale),
        "w_ih1": jax.random.uniform(ks[5], (4 * HID, HID), jnp.float32, -scale, scale),
        "w_hh1": jax.random.uniform(ks[6], (4 * HID, HID), jnp.float32, -scale, scale),
        "b_ih1": jax.random.uniform(ks[7], (4 * HID,), jnp.float32, -scale, scale),
        "b_hh1": jax.random.uniform(ks[8], (4 * HID,), jnp.float32, -scale, scale),
        "w_out": jax.random.uniform(ks[9], (VOCAB, HID), jnp.float32, -scale, scale),
        "b_out": jax.random.uniform(ks[10], (VOCAB,), jnp.float32, -scale, scale),
    }

    # One-time weight preparation (padding / transpose / fuse / bf16 cast).
    prepared = prepare_decoder_params(params, num_layers=LAYERS)

    input_step = jax.random.randint(ks[11], (B, 1), 0, VOCAB, jnp.int32)
    h0 = jax.random.normal(ks[12], (LAYERS, B, HID), jnp.float32)
    c0 = jax.random.normal(ks[13], (LAYERS, B, HID), jnp.float32)

    TOL = dict(atol=2e-2, rtol=2e-2)   # bf16 weights/activations vs f32 reference

    # --- single-step forward (mirrors Decoder.forward) ---
    logits, (h1, c1), attn = decoder_forward(prepared, input_step, (h0, c0))
    jax.block_until_ready((logits, h1, c1))

    ref_logits, ref_h, ref_c = _reference_step(params, input_step[:, 0], h0, c0, LAYERS)
    assert attn is None
    assert jnp.allclose(logits, ref_logits, **TOL)
    assert jnp.allclose(h1, ref_h, **TOL)
    assert jnp.allclose(c1, ref_c, **TOL)

    # --- fused T-step decode (recurrence call + batched projection call) ---
    tokens = jax.random.randint(ks[14], (B, T), 0, VOCAB, jnp.int32)
    logits_T, (hT, cT), _ = decoder_forward_fused(prepared, tokens, (h0, c0))
    jax.block_until_ready((logits_T, hT, cT))

    rh, rc = h0, c0
    for t in range(T):
        rl, rh, rc = _reference_step(params, tokens[:, t], rh, rc, LAYERS)
        assert jnp.allclose(logits_T[t], rl, **TOL)
    assert jnp.allclose(hT, rh, **TOL)
    assert jnp.allclose(cT, rc, **TOL)

    print("KERNEL_OK")
</pallas_src>

<mosaic_0001>
module attributes {stable_mosaic.version = 11 : i64} {
  func.func @kernel(%arg0: i32, %arg1: memref<1x8x128xbf16, #tpu.memory_space<vmem>>, %arg2: memref<2x8x128xf32, #tpu.memory_space<vmem>>, %arg3: memref<2x8x128xf32, #tpu.memory_space<vmem>>, %arg4: memref<128x512xbf16, #tpu.memory_space<vmem>>, %arg5: memref<128x512xbf16, #tpu.memory_space<vmem>>, %arg6: memref<1x512xf32, #tpu.memory_space<vmem>>, %arg7: memref<128x512xbf16, #tpu.memory_space<vmem>>, %arg8: memref<128x512xbf16, #tpu.memory_space<vmem>>, %arg9: memref<1x512xf32, #tpu.memory_space<vmem>>, %arg10: memref<1x8x128xbf16, #tpu.memory_space<vmem>>, %arg11: memref<2x8x128xf32, #tpu.memory_space<vmem>>, %arg12: memref<2x8x128xf32, #tpu.memory_space<vmem>>) attributes {dimension_semantics = [#tpu.dimension_semantics<arbitrary>], iteration_bounds = array<i64: 1>, scalar_prefetch = 0 : i64, scratch_operands = 0 : i64, tpu.core_type = #tpu.core_type<tc>, window_params = [{transform_indices = @transform_0, window_bounds = array<i64: 1, 8, 128>}, {pipeline_mode = #tpu.pipeline_mode<synchronous>, transform_indices = @transform_1, window_bounds = array<i64: 2, 8, 128>}, {pipeline_mode = #tpu.pipeline_mode<synchronous>, transform_indices = @transform_2, window_bounds = array<i64: 2, 8, 128>}, {pipeline_mode = #tpu.pipeline_mode<synchronous>, transform_indices = @transform_3, window_bounds = array<i64: 128, 512>}, {pipeline_mode = #tpu.pipeline_mode<synchronous>, transform_indices = @transform_4, window_bounds = array<i64: 128, 512>}, {pipeline_mode = #tpu.pipeline_mode<synchronous>, transform_indices = @transform_5, window_bounds = array<i64: 1, 512>}, {pipeline_mode = #tpu.pipeline_mode<synchronous>, transform_indices = @transform_6, window_bounds = array<i64: 128, 512>}, {pipeline_mode = #tpu.pipeline_mode<synchronous>, transform_indices = @transform_7, window_bounds = array<i64: 128, 512>}, {pipeline_mode = #tpu.pipeline_mode<synchronous>, transform_indices = @transform_8, window_bounds = array<i64: 1, 512>}, {transform_indices = @transform_9, window_bounds = array<i64: 1, 8, 128>}, {pipeline_mode = #tpu.pipeline_mode<synchronous>, transform_indices = @transform_10, window_bounds = array<i64: 2, 8, 128>}, {pipeline_mode = #tpu.pipeline_mode<synchronous>, transform_indices = @transform_11, window_bounds = array<i64: 2, 8, 128>}]} {
    %c0_i32 = arith.constant 0 : i32
    %0 = arith.cmpi eq, %arg0, %c0_i32 : i32
    %1 = arith.extui %0 : i1 to i32
    %c0_i32_0 = arith.constant 0 : i32
    %2 = arith.cmpi ne, %1, %c0_i32_0 : i32
    scf.if %2 {
      %c0_50 = arith.constant 0 : index
      %c0_51 = arith.constant 0 : index
      %c0_52 = arith.constant 0 : index
      %98 = vector.load %arg2[%c0_50, %c0_51, %c0_52] : memref<2x8x128xf32, #tpu.memory_space<vmem>>, vector<2x8x128xf32>
      %c0_53 = arith.constant 0 : index
      %c0_54 = arith.constant 0 : index
      %c0_55 = arith.constant 0 : index
      %99 = vector.load %arg11[%c0_53, %c0_54, %c0_55] : memref<2x8x128xf32, #tpu.memory_space<vmem>>, vector<2x8x128xf32>
      tpu.vector_store %arg11[%c0_53, %c0_54, %c0_55], %98 {strides = array<i32>} : memref<2x8x128xf32, #tpu.memory_space<vmem>>, vector<2x8x128xf32>,
      %c0_56 = arith.constant 0 : index
      %c0_57 = arith.constant 0 : index
      %c0_58 = arith.constant 0 : index
      %100 = vector.load %arg3[%c0_56, %c0_57, %c0_58] : memref<2x8x128xf32, #tpu.memory_space<vmem>>, vector<2x8x128xf32>
      %c0_59 = arith.constant 0 : index
      %c0_60 = arith.constant 0 : index
      %c0_61 = arith.constant 0 : index
      %101 = vector.load %arg12[%c0_59, %c0_60, %c0_61] : memref<2x8x128xf32, #tpu.memory_space<vmem>>, vector<2x8x128xf32>
      tpu.vector_store %arg12[%c0_59, %c0_60, %c0_61], %100 {strides = array<i32>} : memref<2x8x128xf32, #tpu.memory_space<vmem>>, vector<2x8x128xf32>,
    } else {
    }
    %c0 = arith.constant 0 : index
    %c0_1 = arith.constant 0 : index
    %c0_2 = arith.constant 0 : index
    %3 = vector.load %arg1[%c0, %c0_1, %c0_2] : memref<1x8x128xbf16, #tpu.memory_space<vmem>>, vector<1x8x128xbf16>
    %4 = vector.shape_cast %3 : vector<1x8x128xbf16> to vector<8x128xbf16>
    %c0_3 = arith.constant 0 : index
    %c0_4 = arith.constant 0 : index
    %5 = vector.load %arg4[%c0_3, %c0_4] : memref<128x512xbf16, #tpu.memory_space<vmem>>, vector<128x512xbf16>
    %cst = arith.constant dense<0.000000e+00> : vector<8x512xf32>
    %6 = tpu.matmul %4, %5, %cst {dimension_numbers = #tpu.dot_dimension_numbers<[1], [0], [0], [1], [0, 0, 1, 1], [], []>} : vector<8x128xbf16>, vector<128x512xbf16>, vector<8x512xf32> -> vector<8x512xf32>
    %c0_5 = arith.constant 0 : index
    %c0_6 = arith.constant 0 : index
    %c0_7 = arith.constant 0 : index
    %7 = vector.load %arg11[%c0_5, %c0_6, %c0_7] : memref<2x8x128xf32, #tpu.memory_space<vmem>>, vector<1x8x128xf32>
    %8 = vector.shape_cast %7 : vector<1x8x128xf32> to vector<8x128xf32>
    %9 = arith.truncf %8 : vector<8x128xf32> to vector<8x128xbf16>
    %c0_8 = arith.constant 0 : index
    %c0_9 = arith.constant 0 : index
    %10 = vector.load %arg5[%c0_8, %c0_9] : memref<128x512xbf16, #tpu.memory_space<vmem>>, vector<128x512xbf16>
    %cst_10 = arith.constant dense<0.000000e+00> : vector<8x512xf32>
    %11 = tpu.matmul %9, %10, %cst_10 {dimension_numbers = #tpu.dot_dimension_numbers<[1], [0], [0], [1], [0, 0, 1, 1], [], []>} : vector<8x128xbf16>, vector<128x512xbf16>, vector<8x512xf32> -> vector<8x512xf32>
    %12 = arith.addf %6, %11 : vector<8x512xf32>
    %c0_11 = arith.constant 0 : index
    %c0_12 = arith.constant 0 : index
    %13 = vector.load %arg6[%c0_11, %c0_12] : memref<1x512xf32, #tpu.memory_space<vmem>>, vector<1x512xf32>
    %14 = vector.broadcast %13 : vector<1x512xf32> to vector<8x512xf32>
    %15 = arith.addf %12, %14 : vector<8x512xf32>
    %16 = vector.extract_strided_slice %15 {offsets = [0, 0], sizes = [8, 128], strides = [1, 1]} : vector<8x512xf32> to vector<8x128xf32>
    %17 = arith.negf %16 : vector<8x128xf32>
    %18 = math.exp %17 : vector<8x128xf32>
    %cst_13 = arith.constant 1.000000e+00 : f32
    %19 = vector.broadcast %cst_13 : f32 to vector<8x128xf32>
    %20 = arith.addf %19, %18 : vector<8x128xf32>
    %21 = arith.divf %19, %20 : vector<8x128xf32>
    %22 = vector.extract_strided_slice %15 {offsets = [0, 128], sizes = [8, 128], strides = [1, 1]} : vector<8x512xf32> to vector<8x128xf32>
    %23 = arith.negf %22 : vector<8x128xf32>
    %24 = math.exp %23 : vector<8x128xf32>
    %cst_14 = arith.constant 1.000000e+00 : f32
    %25 = vector.broadcast %cst_14 : f32 to vector<8x128xf32>
    %26 = arith.addf %25, %24 : vector<8x128xf32>
    %27 = arith.divf %25, %26 : vector<8x128xf32>
    %28 = vector.extract_strided_slice %15 {offsets = [0, 256], sizes = [8, 128], strides = [1, 1]} : vector<8x512xf32> to vector<8x128xf32>
    %29 = math.tanh %28 : vector<8x128xf32>
    %30 = vector.extract_strided_slice %15 {offsets = [0, 384], sizes = [8, 128], strides = [1, 1]} : vector<8x512xf32> to vector<8x128xf32>
    %31 = arith.negf %30 : vector<8x128xf32>
    %32 = math.exp %31 : vector<8x128xf32>
    %cst_15 = arith.constant 1.000000e+00 : f32
    %33 = vector.broadcast %cst_15 : f32 to vector<8x128xf32>
    %34 = arith.addf %33, %32 : vector<8x128xf32>
    %35 = arith.divf %33, %34 : vector<8x128xf32>
    %c0_16 = arith.constant 0 : index
    %c0_17 = arith.constant 0 : index
    %c0_18 = arith.constant 0 : index
    %36 = vector.load %arg12[%c0_16, %c0_17, %c0_18] : memref<2x8x128xf32, #tpu.memory_space<vmem>>, vector<1x8x128xf32>
    %37 = vector.shape_cast %36 : vector<1x8x128xf32> to vector<8x128xf32>
    %38 = arith.mulf %27, %37 : vector<8x128xf32>
    %39 = arith.mulf %21, %29 : vector<8x128xf32>
    %40 = arith.addf %38, %39 : vector<8x128xf32>
    %41 = math.tanh %40 : vector<8x128xf32>
    %42 = arith.mulf %35, %41 : vector<8x128xf32>
    %c0_19 = arith.constant 0 : index
    %c0_20 = arith.constant 0 : index
    %c0_21 = arith.constant 0 : index
    %43 = vector.load %arg11[%c0_19, %c0_20, %c0_21] : memref<2x8x128xf32, #tpu.memory_space<vmem>>, vector<1x8x128xf32>
    %44 = vector.shape_cast %43 : vector<1x8x128xf32> to vector<8x128xf32>
    %45 = vector.shape_cast %42 : vector<8x128xf32> to vector<1x8x128xf32>
    tpu.vector_store %arg11[%c0_19, %c0_20, %c0_21], %45 {strides = array<i32>} : memref<2x8x128xf32, #tpu.memory_space<vmem>>, vector<1x8x128xf32>,
    %c0_22 = arith.constant 0 : index
    %c0_23 = arith.constant 0 : index
    %c0_24 = arith.constant 0 : index
    %46 = vector.load %arg12[%c0_22, %c0_23, %c0_24] : memref<2x8x128xf32, #tpu.memory_space<vmem>>, vector<1x8x128xf32>
    %47 = vector.shape_cast %46 : vector<1x8x128xf32> to vector<8x128xf32>
    %48 = vector.shape_cast %40 : vector<8x128xf32> to vector<1x8x128xf32>
    tpu.vector_store %arg12[%c0_22, %c0_23, %c0_24], %48 {strides = array<i32>} : memref<2x8x128xf32, #tpu.memory_space<vmem>>, vector<1x8x128xf32>,
    %49 = arith.truncf %42 : vector<8x128xf32> to vector<8x128xbf16>
    %c0_25 = arith.constant 0 : index
    %c0_26 = arith.constant 0 : index
    %50 = vector.load %arg7[%c0_25, %c0_26] : memref<128x512xbf16, #tpu.memory_space<vmem>>, vector<128x512xbf16>
    %cst_27 = arith.constant dense<0.000000e+00> : vector<8x512xf32>
    %51 = tpu.matmul %49, %50, %cst_27 {dimension_numbers = #tpu.dot_dimension_numbers<[1], [0], [0], [1], [0, 0, 1, 1], [], []>} : vector<8x128xbf16>, vector<128x512xbf16>, vector<8x512xf32> -> vector<8x512xf32>
    %c1 = arith.constant 1 : index
    %c0_28 = arith.constant 0 : index
    %c0_29 = arith.constant 0 : index
    %52 = vector.load %arg11[%c1, %c0_28, %c0_29] : memref<2x8x128xf32, #tpu.memory_space<vmem>>, vector<1x8x128xf32>
    %53 = vector.shape_cast %52 : vector<1x8x128xf32> to vector<8x128xf32>
    %54 = arith.truncf %53 : vector<8x128xf32> to vector<8x128xbf16>
    %c0_30 = arith.constant 0 : index
    %c0_31 = arith.constant 0 : index
    %55 = vector.load %arg8[%c0_30, %c0_31] : memref<128x512xbf16, #tpu.memory_space<vmem>>, vector<128x512xbf16>
    %cst_32 = arith.constant dense<0.000000e+00> : vector<8x512xf32>
    %56 = tpu.matmul %54, %55, %cst_32 {dimension_numbers = #tpu.dot_dimension_numbers<[1], [0], [0], [1], [0, 0, 1, 1], [], []>} : vector<8x128xbf16>, vector<128x512xbf16>, vector<8x512xf32> -> vector<8x512xf32>
    %57 = arith.addf %51, %56 : vector<8x512xf32>
    %c0_33 = arith.constant 0 : index
    %c0_34 = arith.constant 0 : index
    %58 = vector.load %arg9[%c0_33, %c0_34] : memref<1x512xf32, #tpu.memory_space<vmem>>, vector<1x512xf32>
    %59 = vector.broadcast %58 : vector<1x512xf32> to vector<8x512xf32>
    %60 = arith.addf %57, %59 : vector<8x512xf32>
    %61 = vector.extract_strided_slice %60 {offsets = [0, 0], sizes = [8, 128], strides = [1, 1]} : vector<8x512xf32> to vector<8x128xf32>
    %62 = arith.negf %61 : vector<8x128xf32>
    %63 = math.exp %62 : vector<8x128xf32>
    %cst_35 = arith.constant 1.000000e+00 : f32
    %64 = vector.broadcast %cst_35 : f32 to vector<8x128xf32>
    %65 = arith.addf %64, %63 : vector<8x128xf32>
    %66 = arith.divf %64, %65 : vector<8x128xf32>
    %67 = vector.extract_strided_slice %60 {offsets = [0, 128], sizes = [8, 128], strides = [1, 1]} : vector<8x512xf32> to vector<8x128xf32>
    %68 = arith.negf %67 : vector<8x128xf32>
    %69 = math.exp %68 : vector<8x128xf32>
    %cst_36 = arith.constant 1.000000e+00 : f32
    %70 = vector.broadcast %cst_36 : f32 to vector<8x128xf32>
    %71 = arith.addf %70, %69 : vector<8x128xf32>
    %72 = arith.divf %70, %71 : vector<8x128xf32>
    %73 = vector.extract_strided_slice %60 {offsets = [0, 256], sizes = [8, 128], strides = [1, 1]} : vector<8x512xf32> to vector<8x128xf32>
    %74 = math.tanh %73 : vector<8x128xf32>
    %75 = vector.extract_strided_slice %60 {offsets = [0, 384], sizes = [8, 128], strides = [1, 1]} : vector<8x512xf32> to vector<8x128xf32>
    %76 = arith.negf %75 : vector<8x128xf32>
    %77 = math.exp %76 : vector<8x128xf32>
    %cst_37 = arith.constant 1.000000e+00 : f32
    %78 = vector.broadcast %cst_37 : f32 to vector<8x128xf32>
    %79 = arith.addf %78, %77 : vector<8x128xf32>
    %80 = arith.divf %78, %79 : vector<8x128xf32>
    %c1_38 = arith.constant 1 : index
    %c0_39 = arith.constant 0 : index
    %c0_40 = arith.constant 0 : index
    %81 = vector.load %arg12[%c1_38, %c0_39, %c0_40] : memref<2x8x128xf32, #tpu.memory_space<vmem>>, vector<1x8x128xf32>
    %82 = vector.shape_cast %81 : vector<1x8x128xf32> to vector<8x128xf32>
    %83 = arith.mulf %72, %82 : vector<8x128xf32>
    %84 = arith.mulf %66, %74 : vector<8x128xf32>
    %85 = arith.addf %83, %84 : vector<8x128xf32>
    %86 = math.tanh %85 : vector<8x128xf32>
    %87 = arith.mulf %80, %86 : vector<8x128xf32>
    %c1_41 = arith.constant 1 : index
    %c0_42 = arith.constant 0 : index
    %c0_43 = arith.constant 0 : index
    %88 = vector.load %arg11[%c1_41, %c0_42, %c0_43] : memref<2x8x128xf32, #tpu.memory_space<vmem>>, vector<1x8x128xf32>
    %89 = vector.shape_cast %88 : vector<1x8x128xf32> to vector<8x128xf32>
    %90 = vector.shape_cast %87 : vector<8x128xf32> to vector<1x8x128xf32>
    tpu.vector_store %arg11[%c1_41, %c0_42, %c0_43], %90 {strides = array<i32>} : memref<2x8x128xf32, #tpu.memory_space<vmem>>, vector<1x8x128xf32>,
    %c1_44 = arith.constant 1 : index
    %c0_45 = arith.constant 0 : index
    %c0_46 = arith.constant 0 : index
    %91 = vector.load %arg12[%c1_44, %c0_45, %c0_46] : memref<2x8x128xf32, #tpu.memory_space<vmem>>, vector<1x8x128xf32>
    %92 = vector.shape_cast %91 : vector<1x8x128xf32> to vector<8x128xf32>
    %93 = vector.shape_cast %85 : vector<8x128xf32> to vector<1x8x128xf32>
    tpu.vector_store %arg12[%c1_44, %c0_45, %c0_46], %93 {strides = array<i32>} : memref<2x8x128xf32, #tpu.memory_space<vmem>>, vector<1x8x128xf32>,
    %94 = arith.truncf %87 : vector<8x128xf32> to vector<8x128xbf16>
    %c0_47 = arith.constant 0 : index
    %c0_48 = arith.constant 0 : index
    %c0_49 = arith.constant 0 : index
    %95 = vector.load %arg10[%c0_47, %c0_48, %c0_49] : memref<1x8x128xbf16, #tpu.memory_space<vmem>>, vector<1x8x128xbf16>
    %96 = vector.shape_cast %95 : vector<1x8x128xbf16> to vector<8x128xbf16>
    %97 = vector.shape_cast %94 : vector<8x128xbf16> to vector<1x8x128xbf16>
    tpu.vector_store %arg10[%c0_47, %c0_48, %c0_49], %97 {strides = array<i32>} : memref<1x8x128xbf16, #tpu.memory_space<vmem>>, vector<1x8x128xbf16>,
    return
  }
  func.func @transform_0(%arg0: i32) -> (i32, i32, i32) {
    %c0_i32 = arith.constant 0 : i32
    %c0_i32_0 = arith.constant 0 : i32
    %c0_i32_1 = arith.constant 0 : i32
    return %arg0, %c0_i32, %c0_i32_0 : i32, i32, i32
  }
  func.func @transform_1(%arg0: i32) -> (i32, i32, i32) {
    %c0_i32 = arith.constant 0 : i32
    %c0_i32_0 = arith.constant 0 : i32
    %c0_i32_1 = arith.constant 0 : i32
    %c0_i32_2 = arith.constant 0 : i32
    return %c0_i32, %c0_i32_0, %c0_i32_1 : i32, i32, i32
  }
  func.func @transform_2(%arg0: i32) -> (i32, i32, i32) {
    %c0_i32 = arith.constant 0 : i32
    %c0_i32_0 = arith.constant 0 : i32
    %c0_i32_1 = arith.constant 0 : i32
    %c0_i32_2 = arith.constant 0 : i32
    return %c0_i32, %c0_i32_0, %c0_i32_1 : i32, i32, i32
  }
  func.func @transform_3(%arg0: i32) -> (i32, i32) {
    %c0_i32 = arith.constant 0 : i32
    %c0_i32_0 = arith.constant 0 : i32
    %c0_i32_1 = arith.constant 0 : i32
    return %c0_i32, %c0_i32_0 : i32, i32
  }
  func.func @transform_4(%arg0: i32) -> (i32, i32) {
    %c0_i32 = arith.constant 0 : i32
    %c0_i32_0 = arith.constant 0 : i32
    %c0_i32_1 = arith.constant 0 : i32
    return %c0_i32, %c0_i32_0 : i32, i32
  }
  func.func @transform_5(%arg0: i32) -> (i32, i32) {
    %c0_i32 = arith.constant 0 : i32
    %c0_i32_0 = arith.constant 0 : i32
    %c0_i32_1 = arith.constant 0 : i32
    return %c0_i32, %c0_i32_0 : i32, i32
  }
  func.func @transform_6(%arg0: i32) -> (i32, i32) {
    %c0_i32 = arith.constant 0 : i32
    %c0_i32_0 = arith.constant 0 : i32
    %c0_i32_1 = arith.constant 0 : i32
    return %c0_i32, %c0_i32_0 : i32, i32
  }
  func.func @transform_7(%arg0: i32) -> (i32, i32) {
    %c0_i32 = arith.constant 0 : i32
    %c0_i32_0 = arith.constant 0 : i32
    %c0_i32_1 = arith.constant 0 : i32
    return %c0_i32, %c0_i32_0 : i32, i32
  }
  func.func @transform_8(%arg0: i32) -> (i32, i32) {
    %c0_i32 = arith.constant 0 : i32
    %c0_i32_0 = arith.constant 0 : i32
    %c0_i32_1 = arith.constant 0 : i32
    return %c0_i32, %c0_i32_0 : i32, i32
  }
  func.func @transform_9(%arg0: i32) -> (i32, i32, i32) {
    %c0_i32 = arith.constant 0 : i32
    %c0_i32_0 = arith.constant 0 : i32
    %c0_i32_1 = arith.constant 0 : i32
    return %arg0, %c0_i32, %c0_i32_0 : i32, i32, i32
  }
  func.func @transform_10(%arg0: i32) -> (i32, i32, i32) {
    %c0_i32 = arith.constant 0 : i32
    %c0_i32_0 = arith.constant 0 : i32
    %c0_i32_1 = arith.constant 0 : i32
    %c0_i32_2 = arith.constant 0 : i32
    return %c0_i32, %c0_i32_0, %c0_i32_1 : i32, i32, i32
  }
  func.func @transform_11(%arg0: i32) -> (i32, i32, i32) {
    %c0_i32 = arith.constant 0 : i32
    %c0_i32_0 = arith.constant 0 : i32
    %c0_i32_1 = arith.constant 0 : i32
    %c0_i32_2 = arith.constant 0 : i32
    return %c0_i32, %c0_i32_0, %c0_i32_1 : i32, i32, i32
  }
}

</mosaic_0001>

<bundles_post_ra>
// kernel: tpu_custom_call.1
= control target key start
LH: loop header
LB: loop body
LE: loop exit
PB: predicated region body
PF: predicated region fallthrough
CT: control target
= control target key end

     0   :  { %17 = vsyncpa [#allocation3], 0  ;;  %s2234_s0 = inlined_call_operand.vmem [shape: bf16[1,8,128], index: 0, kind: input, shape index: {}]   ;;  %s2235_s1 = inlined_call_operand.hbm [shape: f32[2,8,128], index: 1, kind: input, shape index: {}, may-alias: {1,10}]   ;;  %s2236_s2 = inlined_call_operand.hbm [shape: f32[2,8,128], index: 2, kind: input, shape index: {}, may-alias: {2,11}]   ;;  %s2237_s3 = inlined_call_operand.hbm [shape: bf16[128,512], index: 3, kind: input, shape index: {}]   ;;  %s2238_s4 = inlined_call_operand.hbm [shape: bf16[128,512], index: 4, kind: input, shape index: {}]   ;;  %s2239_s5 = inlined_call_operand.vmem [shape: f32[1,512], index: 5, kind: input, shape index: {}]   ;;  %s2240_s6 = inlined_call_operand.hbm [shape: bf16[128,512], index: 6, kind: input, shape index: {}]   ;;  %s2241_s7 = inlined_call_operand.hbm [shape: bf16[128,512], index: 7, kind: input, shape index: {}]   ;;  %s2242_s8 = inlined_call_operand.vmem [shape: f32[1,512], index: 8, kind: input, shape index: {}]   ;;  %s2243_s9 = inlined_call_operand.hbm [shape: bf16[1,8,128], index: 9, kind: output, shape index: {0}]   ;;  %s2244_s10 = inlined_call_operand.hbm [shape: f32[2,8,128], index: 10, kind: output, shape index: {1}, may-alias: {1,10}]   ;;  %s2245_s11 = inlined_call_operand.hbm [shape: f32[2,8,128], index: 11, kind: output, shape index: {2}, may-alias: {2,11}]  }
   0x1   :  { %18 = vsyncpa [#allocation6], 0 }
   0x2   :  { %19 = vsyncpa [#allocation9], 0 }
   0x3   :  { %20 = vsyncpa [#allocation12], 0 }
   0x4   :  { %21 = vsyncpa [#allocation4], 0 }
   0x5   :  { %22 = vsyncpa [#allocation15], 0  ;;  %s1975_s17 = smov [#allocation5]   ;;  %s1765_s21 = scalar_lea.hbm %s2236_s2, 256 }
   0x6   :  { %s42_s18 = sshll.u32 %s1975_s17, 4  ;;  %p1766_p0 = scmp.ne.s32.totalorder %s2236_s2, %s1765_s21  ;;  %s43_s18 = int_to_ptr.vmem [resolvable:$true] %s42_s18 }
   0x7   :  { %p1769_p1 = scmp.lt.u32.totalorder %s1765_s21, %s2236_s2 }
   0x9   :  { %p1771_p2 = pnand %p1769_p1, %p1766_p0 }
   0xb   :  { %1774 = shalt.err (!%p1771_p2)
}
   0xc   :  { %s1775_s26 = scalar_lea.vmem %s43_s18, 256  ;;  %p1780_p4 = scmp.lt.s32.totalorder %s43_s18, %s43_s18 }
   0xd   :  { %p1776_p3 = scmp.ne.s32.totalorder %s43_s18, %s1775_s26  ;;  %p1781_p5 = scmp.lt.s32.totalorder %s1775_s26, %s1775_s26 }
   0xf   :  { %p1782_p6 = por %p1781_p5, %p1780_p4 }
  0x11   :  { %p1783_p7 = pnand %p1782_p6, %p1776_p3 }
  0x13   :  { %1786 = shalt.err (!%p1783_p7)
}
  0x14   :  { %s1976_s27 = smov 128   ;;  %s1977_s28 = smov 8  }
  0x15   :  { %48 = dma.hbm_to_vmem [thread:$0]  %s2236_s2, 256, %s43_s18, [#allocation6], %s1976_s27, %s1976_s27, %s1977_s28  }
  0x16   :  { %s1978_s12 = smov [#allocation8]   ;;  %s1979_s14 = smov [#allocation2]  }
  0x17   :  { %s66_s13 = sshll.u32 %s1978_s12, 4  ;;  %s30_s15 = sshll.u32 %s1979_s14, 4  ;;  %s67_s13 = int_to_ptr.vmem [resolvable:$true] %s66_s13  ;;  %s31_s15 = int_to_ptr.vmem [resolvable:$true] %s30_s15 }
  0x18   :  { %s1787_s19 = scalar_lea.hbm %s2238_s4, 4096 }
  0x19   :  { %p1788_p8 = scmp.ne.s32.totalorder %s2238_s4, %s1787_s19  ;;  %p1791_p9 = scmp.lt.u32.totalorder %s1787_s19, %s2238_s4 }
  0x1b   :  { %p1793_p10 = pnand %p1791_p9, %p1788_p8 }
  0x1d   :  { %1796 = shalt.err (!%p1793_p10)
}
  0x1e   :  { %s1797_s2 = scalar_lea.vmem %s67_s13, 4096  ;;  %p1802_p12 = scmp.lt.s32.totalorder %s67_s13, %s67_s13 }
  0x1f   :  { %p1798_p11 = scmp.ne.s32.totalorder %s67_s13, %s1797_s2  ;;  %p1803_p13 = scmp.lt.s32.totalorder %s1797_s2, %s1797_s2 }
  0x21   :  { %p1804_p0 = por %p1803_p13, %p1802_p12 }
  0x23   :  { %p1805_p1 = pnand %p1804_p0, %p1798_p11 }
  0x25   :  { %1808 = shalt.err (!%p1805_p1)
}
  0x26   :  { %s1980_s18 = smov 256   ;;  %s1981_s24 = smov 16  }
  0x27   :  { %72 = dma.hbm_to_vmem [thread:$0]  %s2238_s4, 4096, %s67_s13, [#allocation9], %s1980_s18, %s1980_s18, %s1981_s24  }
  0x28   :  { %s1809_s12 = scalar_lea.hbm %s2235_s1, 256 }
  0x29   :  { %p1810_p2 = scmp.ne.s32.totalorder %s2235_s1, %s1809_s12  ;;  %p1813_p3 = scmp.lt.u32.totalorder %s1809_s12, %s2235_s1 }
  0x2b   :  { %p1815_p4 = pnand %p1813_p3, %p1810_p2 }
  0x2d   :  { %1818 = shalt.err (!%p1815_p4)
}
  0x2e   :  { %s1819_s20 = scalar_lea.vmem %s31_s15, 256  ;;  %p1824_p6 = scmp.lt.s32.totalorder %s31_s15, %s31_s15 }
  0x2f   :  { %p1820_p5 = scmp.ne.s32.totalorder %s31_s15, %s1819_s20  ;;  %p1825_p7 = scmp.lt.s32.totalorder %s1819_s20, %s1819_s20 }
  0x31   :  { %p1826_p8 = por %p1825_p7, %p1824_p6 }
  0x33   :  { %p1827_p9 = pnand %p1826_p8, %p1820_p5 }
  0x35   :  { %1830 = shalt.err (!%p1827_p9)
}
  0x36   :  { %36 = dma.hbm_to_vmem [thread:$0]  %s2235_s1, 256, %s31_s15, [#allocation3], %s1976_s27, %s1976_s27, %s1977_s28  }
  0x37   :  { %s1982_s21 = smov [#allocation7]   ;;  %s1983_s23 = smov [#allocation10]  }
  0x38   :  { %s54_s22 = sshll.u32 %s1982_s21, 4  ;;  %s80_s2 = sshll.u32 %s1983_s23, 4  ;;  %s55_s22 = int_to_ptr.vmem [resolvable:$true] %s54_s22  ;;  %s81_s2 = int_to_ptr.vmem [resolvable:$true] %s80_s2 }
  0x39   :  { %s1831_s29 = scalar_lea.hbm %s2237_s3, 4096 }
  0x3a   :  { %p1832_p10 = scmp.ne.s32.totalorder %s2237_s3, %s1831_s29  ;;  %p1835_p11 = scmp.lt.u32.totalorder %s1831_s29, %s2237_s3 }
  0x3c   :  { %p1837_p12 = pnand %p1835_p11, %p1832_p10 }
  0x3e   :  { %1840 = shalt.err (!%p1837_p12)
}
  0x3f   :  { %s1841_s1 = scalar_lea.vmem %s55_s22, 4096  ;;  %p1846_p0 = scmp.lt.s32.totalorder %s55_s22, %s55_s22 }
  0x40   :  { %p1842_p13 = scmp.ne.s32.totalorder %s55_s22, %s1841_s1  ;;  %p1847_p1 = scmp.lt.s32.totalorder %s1841_s1, %s1841_s1 }
  0x42   :  { %p1848_p2 = por %p1847_p1, %p1846_p0 }
  0x44   :  { %p1849_p3 = pnand %p1848_p2, %p1842_p13 }
  0x46   :  { %1852 = shalt.err (!%p1849_p3)
}
  0x47   :  { %60 = dma.hbm_to_vmem [thread:$0]  %s2237_s3, 4096, %s55_s22, [#allocation6], %s1980_s18, %s1980_s18, %s1981_s24  }
  0x48   :  { %s1853_s4 = scalar_lea.hbm %s2240_s6, 4096 }
  0x49   :  { %p1854_p4 = scmp.ne.s32.totalorder %s2240_s6, %s1853_s4  ;;  %p1857_p5 = scmp.lt.u32.totalorder %s1853_s4, %s2240_s6 }
  0x4b   :  { %p1859_p6 = pnand %p1857_p5, %p1854_p4 }
  0x4d   :  { %1862 = shalt.err (!%p1859_p6)
}
  0x4e   :  { %s1863_s26 = scalar_lea.vmem %s81_s2, 4096  ;;  %p1868_p8 = scmp.lt.s32.totalorder %s81_s2, %s81_s2 }
  0x4f   :  { %p1864_p7 = scmp.ne.s32.totalorder %s81_s2, %s1863_s26  ;;  %p1869_p9 = scmp.lt.s32.totalorder %s1863_s26, %s1863_s26 }
  0x51   :  { %p1870_p10 = por %p1869_p9, %p1868_p8 }
  0x53   :  { %p1871_p11 = pnand %p1870_p10, %p1864_p7 }
  0x55   :  { %1874 = shalt.err (!%p1871_p11)
}
  0x56   :  { %86 = dma.hbm_to_vmem [thread:$0]  %s2240_s6, 4096, %s81_s2, [#allocation9], %s1980_s18, %s1980_s18, %s1981_s24  }
  0x57   :  { %s1984_s29 = smov [#allocation11]   ;;  %s1875_s16 = scalar_lea.hbm %s2241_s7, 4096 }
  0x58   :  { %s92_s30 = sshll.u32 %s1984_s29, 4  ;;  %p1876_p12 = scmp.ne.s32.totalorder %s2241_s7, %s1875_s16  ;;  %s93_s30 = int_to_ptr.vmem [resolvable:$true] %s92_s30 }
  0x59   :  { %p1879_p13 = scmp.lt.u32.totalorder %s1875_s16, %s2241_s7 }
  0x5b   :  { %p1881_p0 = pnand %p1879_p13, %p1876_p12 }
  0x5d   :  { %1884 = shalt.err (!%p1881_p0)
}
  0x5e   :  { %s1885_s20 = scalar_lea.vmem %s93_s30, 4096  ;;  %p1890_p2 = scmp.lt.s32.totalorder %s93_s30, %s93_s30 }
  0x5f   :  { %p1886_p1 = scmp.ne.s32.totalorder %s93_s30, %s1885_s20  ;;  %p1891_p3 = scmp.lt.s32.totalorder %s1885_s20, %s1885_s20 }
  0x61   :  { %p1892_p4 = por %p1891_p3, %p1890_p2 }
  0x63   :  { %p1893_p5 = pnand %p1892_p4, %p1886_p1 }
  0x65   :  { %1896 = shalt.err (!%p1893_p5)
}
  0x66   :  { %98 = dma.hbm_to_vmem [thread:$0]  %s2241_s7, 4096, %s93_s30, [#allocation12], %s1980_s18, %s1980_s18, %s1981_s24  }
  0x67   :  { %1963 = dma.done.wait [#allocation3], 256  }
  0x68   :  { %1964 = vsyncadd [#allocation3], 4294967040 }
  0x69   :  { %1965 = dma.done.wait [#allocation6], 4352  }
  0x6a   :  { %1966 = vsyncadd [#allocation6], 4294962944 }
  0x6b   :  { %1967 = dma.done.wait [#allocation9], 8192  }
  0x6c   :  { %1968 = vsyncadd [#allocation9], 4294959104 }
  0x6d   :  { %1969 = dma.done.wait [#allocation12], 4096  }
  0x6e   :  { %1970 = vsyncadd [#allocation12], 4294963200  ;;  %v1985_v0 = vmov 0   ;;  %v1541_v1 = vld [vmem:[#allocation8 + $0x4] ss:$16 sps:$4 sm:$0xff]   ;;  %s1987_s21 = smov [#allocation16]  }
  0x6f   :  { %391 = vmatprep.mubr.bf16.mxu0 %v1985_v0  ;;  %432 = vmatprep.mubr.bf16.mxu1 %v1985_v0  ;;  %v1543_v2 = vld [vmem:[#allocation8 + $0xc] ss:$16 sps:$4 sm:$0xff]   ;;  %v1545_v3 = vld [vmem:[#allocation8] ss:$16 sps:$4 sm:$0xff]   ;;  %v1546_v4 = vld [vmem:[#allocation8 + $0x8] ss:$16 sps:$4 sm:$0xff]  }
  0x70   :  { %359 = vmatprep.subr.bf16.mxu0 %v1541_v1  ;;  %400 = vmatprep.subr.bf16.mxu1 %v1543_v2  ;;  %v1547_v5 = vld [vmem:[#allocation8 + $0x24] ss:$16 sps:$4 sm:$0xff]   ;;  %v1549_v6 = vld [vmem:[#allocation8 + $0x2c] ss:$16 sps:$4 sm:$0xff]   ;;  %v1551_v7 = vld [vmem:[#allocation8 + $0x20] ss:$16 sps:$4 sm:$0xff]  }
  0x71   :  { %360 = vmatpush1.bf16.msra.mxu0 %v1545_v3  ;;  %401 = vmatpush1.bf16.msra.mxu1 %v1546_v4  ;;  %v1552_v8 = vld [vmem:[#allocation8 + $0x28] ss:$16 sps:$4 sm:$0xff]   ;;  %v1553_v9 = vld [vmem:[#allocation8 + $0x44] ss:$16 sps:$4 sm:$0xff]   ;;  %v1555_v10 = vld [vmem:[#allocation8 + $0x4c] ss:$16 sps:$4 sm:$0xff]  }
  0x72   :  { %361 = vmatprep.subr.bf16.mxu0 %v1547_v5  ;;  %402 = vmatprep.subr.bf16.mxu1 %v1549_v6  ;;  %v1557_v11 = vld [vmem:[#allocation8 + $0x40] ss:$16 sps:$4 sm:$0xff]   ;;  %v1558_v12 = vld [vmem:[#allocation8 + $0x48] ss:$16 sps:$4 sm:$0xff]   ;;  %v1559_v13 = vld [vmem:[#allocation8 + $0x64] ss:$16 sps:$4 sm:$0xff]  }
  0x73   :  { %v1561_v14 = vld [vmem:[#allocation8 + $0x6c] ss:$16 sps:$4 sm:$0xff]   ;;  %v1563_v15 = vld [vmem:[#allocation8 + $0x60] ss:$16 sps:$4 sm:$0xff]   ;;  %v1564_v16 = vld [vmem:[#allocation8 + $0x68] ss:$16 sps:$4 sm:$0xff]  }
  0x74   :  { %v1565_v17 = vld [vmem:[#allocation8 + $0x84] ss:$16 sps:$4 sm:$0xff]   ;;  %v1567_v18 = vld [vmem:[#allocation8 + $0x8c] ss:$16 sps:$4 sm:$0xff]   ;;  %v1569_v19 = vld [vmem:[#allocation8 + $0x80] ss:$16 sps:$4 sm:$0xff]  }
  0x75   :  { %362 = vmatpush1.bf16.msra.mxu0 %v1551_v7  ;;  %403 = vmatpush1.bf16.msra.mxu1 %v1552_v8  ;;  %v1570_v20 = vld [vmem:[#allocation8 + $0x88] ss:$16 sps:$4 sm:$0xff]   ;;  %v1571_v21 = vld [vmem:[#allocation8 + $0xa4] ss:$16 sps:$4 sm:$0xff]   ;;  %v1573_v22 = vld [vmem:[#allocation8 + $0xac] ss:$16 sps:$4 sm:$0xff]  }
  0x76   :  { %363 = vmatprep.subr.bf16.mxu0 %v1553_v9  ;;  %404 = vmatprep.subr.bf16.mxu1 %v1555_v10  ;;  %v1575_v23 = vld [vmem:[#allocation8 + $0xa0] ss:$16 sps:$4 sm:$0xff]   ;;  %v1576_v24 = vld [vmem:[#allocation8 + $0xa8] ss:$16 sps:$4 sm:$0xff]   ;;  %v1577_v25 = vld [vmem:[#allocation8 + $0xc4] ss:$16 sps:$4 sm:$0xff]  }
  0x77   :  { %v1579_v26 = vld [vmem:[#allocation8 + $0xcc] ss:$16 sps:$4 sm:$0xff]   ;;  %v1581_v27 = vld [vmem:[#allocation8 + $0xc0] ss:$16 sps:$4 sm:$0xff]   ;;  %v1582_v28 = vld [vmem:[#allocation8 + $0xc8] ss:$16 sps:$4 sm:$0xff]  }
  0x78   :  { %v1583_v29 = vld [vmem:[#allocation8 + $0xe4] ss:$16 sps:$4 sm:$0xff]   ;;  %v1585_v30 = vld [vmem:[#allocation8 + $0xec] ss:$16 sps:$4 sm:$0xff]   ;;  %v1587_v31 = vld [vmem:[#allocation8 + $0xe0] ss:$16 sps:$4 sm:$0xff]  }
  0x79   :  { %364 = vmatpush1.bf16.msra.mxu0 %v1557_v11  ;;  %405 = vmatpush1.bf16.msra.mxu1 %v1558_v12  ;;  %v1588_v32 = vld [vmem:[#allocation8 + $0xe8] ss:$16 sps:$4 sm:$0xff]   ;;  %v124_v33 = vld [vmem:[#allocation2] sm:$0xff]  ;;  %v1594_v35 = vld [vmem:[#allocation7 + $0xc] ss:$16 sps:$4 sm:$0xff]   ;;  %s1371_s23 = sshll.u32 %s1987_s21, 4  ;;  %s2178_s23 = int_to_ptr.vmem [resolvable:$true] %s1371_s23 }
  0x7a   :  { %365 = vmatprep.subr.bf16.mxu0 %v1559_v13  ;;  %406 = vmatprep.subr.bf16.mxu1 %v1561_v14  ;;  %v1591_v34 = vld [vmem:[#allocation7 + $0x4] ss:$16 sps:$4 sm:$0xff]   ;;  %v166_v36 = vpack.c.bf16 %v124_v33, %v124_v33  ;;  %v1589_v37 = vld [vmem:[#allocation7] ss:$16 sps:$4 sm:$0xff]   ;;  %v1592_v38 = vld [vmem:[#allocation7 + $0x8] ss:$16 sps:$4 sm:$0xff]  }
  0x7b   :  { %v1597_v39 = vld [vmem:[#allocation7 + $0x24] ss:$16 sps:$4 sm:$0xff]   ;;  %v1600_v40 = vld [vmem:[#allocation7 + $0x2c] ss:$16 sps:$4 sm:$0xff]   ;;  %v1595_v41 = vld [vmem:[#allocation7 + $0x20] ss:$16 sps:$4 sm:$0xff]  }
  0x7c   :  { %v1598_v42 = vld [vmem:[#allocation7 + $0x28] ss:$16 sps:$4 sm:$0xff]   ;;  %v1603_v43 = vld [vmem:[#allocation7 + $0x44] ss:$16 sps:$4 sm:$0xff]   ;;  %v1606_v44 = vld [vmem:[#allocation7 + $0x4c] ss:$16 sps:$4 sm:$0xff]  }
  0x7d   :  { %366 = vmatpush1.bf16.msra.mxu0 %v1563_v15  ;;  %407 = vmatpush1.bf16.msra.mxu1 %v1564_v16  ;;  %v1601_v45 = vld [vmem:[#allocation7 + $0x40] ss:$16 sps:$4 sm:$0xff]   ;;  %v1604_v46 = vld [vmem:[#allocation7 + $0x48] ss:$16 sps:$4 sm:$0xff]   ;;  %v1609_v47 = vld [vmem:[#allocation7 + $0x64] ss:$16 sps:$4 sm:$0xff]  }
  0x7e   :  { %367 = vmatprep.subr.bf16.mxu0 %v1565_v17  ;;  %408 = vmatprep.subr.bf16.mxu1 %v1567_v18  ;;  %v1612_v48 = vld [vmem:[#allocation7 + $0x6c] ss:$16 sps:$4 sm:$0xff]   ;;  %v1607_v49 = vld [vmem:[#allocation7 + $0x60] ss:$16 sps:$4 sm:$0xff]   ;;  %v1610_v50 = vld [vmem:[#allocation7 + $0x68] ss:$16 sps:$4 sm:$0xff]  }
  0x7f   :  { %v1615_v51 = vld [vmem:[#allocation7 + $0x84] ss:$16 sps:$4 sm:$0xff]   ;;  %v1618_v52 = vld [vmem:[#allocation7 + $0x8c] ss:$16 sps:$4 sm:$0xff]   ;;  %v1613_v53 = vld [vmem:[#allocation7 + $0x80] ss:$16 sps:$4 sm:$0xff]  }
  0x80   :  { %v1616_v54 = vld [vmem:[#allocation7 + $0x88] ss:$16 sps:$4 sm:$0xff]   ;;  %v1621_v55 = vld [vmem:[#allocation7 + $0xa4] ss:$16 sps:$4 sm:$0xff]   ;;  %v1624_v56 = vld [vmem:[#allocation7 + $0xac] ss:$16 sps:$4 sm:$0xff]  }
  0x81   :  { %368 = vmatpush1.bf16.msra.mxu0 %v1569_v19  ;;  %409 = vmatpush1.bf16.msra.mxu1 %v1570_v20  ;;  %v1619_v57 = vld [vmem:[#allocation7 + $0xa0] ss:$16 sps:$4 sm:$0xff]   ;;  %v1622_v58 = vld [vmem:[#allocation7 + $0xa8] ss:$16 sps:$4 sm:$0xff]   ;;  %v1627_v59 = vld [vmem:[#allocation7 + $0xc4] ss:$16 sps:$4 sm:$0xff]  }
  0x82   :  { %369 = vmatprep.subr.bf16.mxu0 %v1571_v21  ;;  %410 = vmatprep.subr.bf16.mxu1 %v1573_v22  ;;  %v1630_v60 = vld [vmem:[#allocation7 + $0xcc] ss:$16 sps:$4 sm:$0xff]   ;;  %v1625_v61 = vld [vmem:[#allocation7 + $0xc0] ss:$16 sps:$4 sm:$0xff]   ;;  %v1628_v62 = vld [vmem:[#allocation7 + $0xc8] ss:$16 sps:$4 sm:$0xff]  }
  0x83   :  { %v1633_v63 = vld [vmem:[#allocation7 + $0xe4] ss:$16 sps:$4 sm:$0xff]   ;;  %v1636_v1 = vld [vmem:[#allocation7 + $0xec] ss:$16 sps:$4 sm:$0xff]   ;;  %v1631_v2 = vld [vmem:[#allocation7 + $0xe0] ss:$16 sps:$4 sm:$0xff]  }
  0x84   :  { %v1634_v3 = vld [vmem:[#allocation7 + $0xe8] ss:$16 sps:$4 sm:$0xff]   ;;  %v132_v4 = vld [vmem:[%s2234_s0] sm:$0xf]  ;;  %v1639_v6 = vld [vmem:[#allocation11 + $0x4] ss:$16 sps:$4 sm:$0xff]  }
  0x85   :  { %370 = vmatpush1.bf16.msra.mxu0 %v1575_v23  ;;  %411 = vmatpush1.bf16.msra.mxu1 %v1576_v24  ;;  %v1637_v5 = vld [vmem:[#allocation11] ss:$16 sps:$4 sm:$0xff]   ;;  %v1640_v7 = vld [vmem:[#allocation11 + $0x8] ss:$16 sps:$4 sm:$0xff]   ;;  %v1642_v8 = vld [vmem:[#allocation11 + $0xc] ss:$16 sps:$4 sm:$0xff]  }
  0x86   :  { %371 = vmatprep.subr.bf16.mxu0 %v1577_v25  ;;  %412 = vmatprep.subr.bf16.mxu1 %v1579_v26  ;;  %v1645_v9 = vld [vmem:[#allocation11 + $0x24] ss:$16 sps:$4 sm:$0xff]   ;;  %v1648_v10 = vld [vmem:[#allocation11 + $0x2c] ss:$16 sps:$4 sm:$0xff]   ;;  %v1643_v11 = vld [vmem:[#allocation11 + $0x20] ss:$16 sps:$4 sm:$0xff]  }
  0x87   :  { %v1646_v12 = vld [vmem:[#allocation11 + $0x28] ss:$16 sps:$4 sm:$0xff]   ;;  %v1651_v13 = vld [vmem:[#allocation11 + $0x44] ss:$16 sps:$4 sm:$0xff]   ;;  %v1654_v14 = vld [vmem:[#allocation11 + $0x4c] ss:$16 sps:$4 sm:$0xff]  }
  0x88   :  { %v1649_v15 = vld [vmem:[#allocation11 + $0x40] ss:$16 sps:$4 sm:$0xff]   ;;  %v1652_v16 = vld [vmem:[#allocation11 + $0x48] ss:$16 sps:$4 sm:$0xff]   ;;  %v1657_v17 = vld [vmem:[#allocation11 + $0x64] ss:$16 sps:$4 sm:$0xff]  }
  0x89   :  { %372 = vmatpush1.bf16.msra.mxu0 %v1581_v27  ;;  %413 = vmatpush1.bf16.msra.mxu1 %v1582_v28  ;;  %v1660_v18 = vld [vmem:[#allocation11 + $0x6c] ss:$16 sps:$4 sm:$0xff]   ;;  %v1655_v19 = vld [vmem:[#allocation11 + $0x60] ss:$16 sps:$4 sm:$0xff]   ;;  %v1658_v20 = vld [vmem:[#allocation11 + $0x68] ss:$16 sps:$4 sm:$0xff]  }
  0x8a   :  { %373 = vmatprep.subr.bf16.mxu0 %v1583_v29  ;;  %414 = vmatprep.subr.bf16.mxu1 %v1585_v30  ;;  %v1663_v21 = vld [vmem:[#allocation11 + $0x84] ss:$16 sps:$4 sm:$0xff]   ;;  %v1661_v22 = vld [vmem:[#allocation11 + $0x80] ss:$16 sps:$4 sm:$0xff]   ;;  %v1666_v23 = vld [vmem:[#allocation11 + $0x8c] ss:$16 sps:$4 sm:$0xff]  }
  0x8b   :  { %v1664_v24 = vld [vmem:[#allocation11 + $0x88] ss:$16 sps:$4 sm:$0xff]   ;;  %v1669_v25 = vld [vmem:[#allocation11 + $0xa4] ss:$16 sps:$4 sm:$0xff]   ;;  %v1667_v26 = vld [vmem:[#allocation11 + $0xa0] ss:$16 sps:$4 sm:$0xff]  }
  0x8c   :  { %v1672_v27 = vld [vmem:[#allocation11 + $0xac] ss:$16 sps:$4 sm:$0xff]   ;;  %v1670_v28 = vld [vmem:[#allocation11 + $0xa8] ss:$16 sps:$4 sm:$0xff]   ;;  %v1675_v29 = vld [vmem:[#allocation11 + $0xc4] ss:$16 sps:$4 sm:$0xff]  }
  0x8d   :  { %374 = vmatpush1.bf16.msra.mxu0 %v1587_v31  ;;  %415 = vmatpush1.bf16.msra.mxu1 %v1588_v32  ;;  %v1673_v30 = vld [vmem:[#allocation11 + $0xc0] ss:$16 sps:$4 sm:$0xff]   ;;  %v1678_v31 = vld [vmem:[#allocation11 + $0xcc] ss:$16 sps:$4 sm:$0xff]   ;;  %v1676_v32 = vld [vmem:[#allocation11 + $0xc8] ss:$16 sps:$4 sm:$0xff]  }
  0x8e   :  { %601 = vmatprep.subr.bf16.mxu0 %v1591_v34  ;;  %642 = vmatprep.subr.bf16.mxu1 %v1594_v35  ;;  %v1681_v33 = vld [vmem:[#allocation11 + $0xe4] ss:$16 sps:$4 sm:$0xff]   ;;  %v1679_v34 = vld [vmem:[#allocation11 + $0xe0] ss:$16 sps:$4 sm:$0xff]   ;;  %v1684_v35 = vld [vmem:[#allocation11 + $0xec] ss:$16 sps:$4 sm:$0xff]  }
  0x8f   :  { %s1988_s25 = smov [#allocation13]  }
  0x90   :  { %392 = vmatmul.mubr.bf16.vlgmr.msra.gmra.mrb[0].mxu0 %v166_v36  ;;  %433 = vmatmul.mubr.bf16.vlgmr.msra.gmra.mrb[0].mxu1 %v166_v36  ;;  %v1682_v36 = vld [vmem:[#allocation11 + $0xe8] ss:$16 sps:$4 sm:$0xff]   ;;  %s1350_s26 = sshll.u32 %s1988_s25, 4  ;;  %s2180_s26 = int_to_ptr.vmem [resolvable:$true] %s1350_s26 }
  0x91   :  { %602 = vmatpush1.bf16.msra.mxu0 %v1589_v37  ;;  %643 = vmatpush1.bf16.msra.mxu1 %v1592_v38  ;;  %v125_v37 = vld [vmem:[#allocation2 + $0x8] sm:$0xff] }
  0x92   :  { %603 = vmatprep.subr.bf16.mxu0 %v1597_v39  ;;  %644 = vmatprep.subr.bf16.mxu1 %v1600_v40  ;;  %v771_v38 = vpack.c.bf16 %v125_v37, %v125_v37  ;;  %v1687_v39 = vld [vmem:[#allocation10 + $0x4] ss:$16 sps:$4 sm:$0xff]   ;;  %v1690_v40 = vld [vmem:[#allocation10 + $0xc] ss:$16 sps:$4 sm:$0xff]  }
  0x93   :  { %633 = vmatprep.mubr.bf16.mxu0 %v1985_v0  ;;  %674 = vmatprep.mubr.bf16.mxu1 %v1985_v0 }
  0x95   :  { %604 = vmatpush1.bf16.msra.mxu0 %v1595_v41  ;;  %645 = vmatpush1.bf16.msra.mxu1 %v1598_v42  ;;  %v1685_v41 = vld [vmem:[#allocation10] ss:$16 sps:$4 sm:$0xff]   ;;  %v1688_v42 = vld [vmem:[#allocation10 + $0x8] ss:$16 sps:$4 sm:$0xff]  }
  0x96   :  { %605 = vmatprep.subr.bf16.mxu0 %v1603_v43  ;;  %646 = vmatprep.subr.bf16.mxu1 %v1606_v44  ;;  %v1693_v43 = vld [vmem:[#allocation10 + $0x24] ss:$16 sps:$4 sm:$0xff]   ;;  %v1696_v44 = vld [vmem:[#allocation10 + $0x2c] ss:$16 sps:$4 sm:$0xff]  }
  0x99   :  { %606 = vmatpush1.bf16.msra.mxu0 %v1601_v45  ;;  %647 = vmatpush1.bf16.msra.mxu1 %v1604_v46  ;;  %v1691_v45 = vld [vmem:[#allocation10 + $0x20] ss:$16 sps:$4 sm:$0xff]   ;;  %v1694_v46 = vld [vmem:[#allocation10 + $0x28] ss:$16 sps:$4 sm:$0xff]  }
  0x9a   :  { %607 = vmatprep.subr.bf16.mxu0 %v1609_v47  ;;  %648 = vmatprep.subr.bf16.mxu1 %v1612_v48  ;;  %v1699_v47 = vld [vmem:[#allocation10 + $0x44] ss:$16 sps:$4 sm:$0xff]   ;;  %v1702_v48 = vld [vmem:[#allocation10 + $0x4c] ss:$16 sps:$4 sm:$0xff]  }
  0x9d   :  { %608 = vmatpush1.bf16.msra.mxu0 %v1607_v49  ;;  %649 = vmatpush1.bf16.msra.mxu1 %v1610_v50  ;;  %v1697_v49 = vld [vmem:[#allocation10 + $0x40] ss:$16 sps:$4 sm:$0xff]   ;;  %v1700_v50 = vld [vmem:[#allocation10 + $0x48] ss:$16 sps:$4 sm:$0xff]  }
  0x9e   :  { %609 = vmatprep.subr.bf16.mxu0 %v1615_v51  ;;  %650 = vmatprep.subr.bf16.mxu1 %v1618_v52  ;;  %v1705_v51 = vld [vmem:[#allocation10 + $0x64] ss:$16 sps:$4 sm:$0xff]   ;;  %v1708_v52 = vld [vmem:[#allocation10 + $0x6c] ss:$16 sps:$4 sm:$0xff]  }
  0xa1   :  { %610 = vmatpush1.bf16.msra.mxu0 %v1613_v53  ;;  %651 = vmatpush1.bf16.msra.mxu1 %v1616_v54  ;;  %v1703_v53 = vld [vmem:[#allocation10 + $0x60] ss:$16 sps:$4 sm:$0xff]   ;;  %v1706_v54 = vld [vmem:[#allocation10 + $0x68] ss:$16 sps:$4 sm:$0xff]  }
  0xa2   :  { %611 = vmatprep.subr.bf16.mxu0 %v1621_v55  ;;  %652 = vmatprep.subr.bf16.mxu1 %v1624_v56  ;;  %v1714_v55 = vld [vmem:[#allocation10 + $0x8c] ss:$16 sps:$4 sm:$0xff]   ;;  %v1709_v56 = vld [vmem:[#allocation10 + $0x80] ss:$16 sps:$4 sm:$0xff]  }
  0xa5   :  { %612 = vmatpush1.bf16.msra.mxu0 %v1619_v57  ;;  %653 = vmatpush1.bf16.msra.mxu1 %v1622_v58  ;;  %v1712_v57 = vld [vmem:[#allocation10 + $0x88] ss:$16 sps:$4 sm:$0xff]   ;;  %v1717_v58 = vld [vmem:[#allocation10 + $0xa4] ss:$16 sps:$4 sm:$0xff]  }
  0xa6   :  { %613 = vmatprep.subr.bf16.mxu0 %v1627_v59  ;;  %654 = vmatprep.subr.bf16.mxu1 %v1630_v60  ;;  %v1715_v59 = vld [vmem:[#allocation10 + $0xa0] ss:$16 sps:$4 sm:$0xff]   ;;  %v1720_v60 = vld [vmem:[#allocation10 + $0xac] ss:$16 sps:$4 sm:$0xff]  }
  0xa9   :  { %614 = vmatpush1.bf16.msra.mxu0 %v1625_v61  ;;  %655 = vmatpush1.bf16.msra.mxu1 %v1628_v62  ;;  %v1718_v61 = vld [vmem:[#allocation10 + $0xa8] ss:$16 sps:$4 sm:$0xff]   ;;  %v1723_v62 = vld [vmem:[#allocation10 + $0xc4] ss:$16 sps:$4 sm:$0xff]  }
  0xaa   :  { %615 = vmatprep.subr.bf16.mxu0 %v1633_v63  ;;  %656 = vmatprep.subr.bf16.mxu1 %v1636_v1  ;;  %v1726_v63 = vld [vmem:[#allocation10 + $0xcc] ss:$16 sps:$4 sm:$0xff]   ;;  %v1721_v1 = vld [vmem:[#allocation10 + $0xc0] ss:$16 sps:$4 sm:$0xff]  }
  0xad   :  { %616 = vmatpush1.bf16.msra.mxu0 %v1631_v2  ;;  %657 = vmatpush1.bf16.msra.mxu1 %v1634_v3  ;;  %v1724_v2 = vld [vmem:[#allocation10 + $0xc8] ss:$16 sps:$4 sm:$0xff]   ;;  %v1729_v3 = vld [vmem:[#allocation10 + $0xe4] ss:$16 sps:$4 sm:$0xff]  }
  0xae   :  { %964 = vmatprep.subr.bf16.mxu0 %v1639_v6  ;;  %1005 = vmatprep.subr.bf16.mxu1 %v1642_v8  ;;  %v1730_v6 = vld [vmem:[#allocation10 + $0xe8] ss:$16 sps:$4 sm:$0xff]  }
  0xb0   :  { %634 = vmatmul.mubr.bf16.vlgmr.msra.gmra.mrb[4].mxu0 %v132_v4  ;;  %675 = vmatmul.mubr.bf16.vlgmr.msra.gmra.mrb[4].mxu1 %v132_v4  ;;  %v1732_v4 = vld [vmem:[#allocation10 + $0xec] ss:$16 sps:$4 sm:$0xff]  }
  0xb1   :  { %996 = vmatprep.mubr.bf16.mxu0 %v1985_v0  ;;  %1037 = vmatprep.mubr.bf16.mxu1 %v1985_v0 }
  0xb2   :  { %965 = vmatpush1.bf16.msra.mxu0 %v1637_v5  ;;  %1006 = vmatpush1.bf16.msra.mxu1 %v1640_v7  ;;  %v1727_v5 = vld [vmem:[#allocation10 + $0xe0] ss:$16 sps:$4 sm:$0xff]  }
  0xb3   :  { %966 = vmatprep.subr.bf16.mxu0 %v1645_v9  ;;  %1007 = vmatprep.subr.bf16.mxu1 %v1648_v10 }
  0xb6   :  { %967 = vmatpush1.bf16.msra.mxu0 %v1643_v11  ;;  %1008 = vmatpush1.bf16.msra.mxu1 %v1646_v12 }
  0xb7   :  { %968 = vmatprep.subr.bf16.mxu0 %v1651_v13  ;;  %1009 = vmatprep.subr.bf16.mxu1 %v1654_v14 }
  0xba   :  { %969 = vmatpush1.bf16.msra.mxu0 %v1649_v15  ;;  %1010 = vmatpush1.bf16.msra.mxu1 %v1652_v16  ;;  %v685_v15 = vlaneseq }
  0xbb   :  { %970 = vmatprep.subr.bf16.mxu0 %v1657_v17  ;;  %1011 = vmatprep.subr.bf16.mxu1 %v1660_v18  ;;  %v683_v18 = vld [vmem:[%s2239_s5] sm:$0xf] }
  0xbc   :  { %v2150_v16 = vshrl.u32 %v685_v15, 7 }
  0xbe   :  { %971 = vmatpush1.bf16.msra.mxu0 %v1655_v19  ;;  %1012 = vmatpush1.bf16.msra.mxu1 %v1658_v20  ;;  %v687_v17 = vsub.s32 0, %v2150_v16  ;;  %v691_v19 = vsub.s32 1, %v2150_v16 }
  0xbf   :  { %972 = vmatprep.subr.bf16.mxu0 %v1663_v21  ;;  %1013 = vmatprep.subr.bf16.mxu1 %v1666_v23 }
  0xc0   :  { %v688_v20 = vrot.slane %v683_v18, %v687_v17  ;;  %v692_v23 = vrot.slane %v683_v18, %v691_v19 }
  0xc2   :  { %973 = vmatpush1.bf16.msra.mxu0 %v1661_v22  ;;  %1014 = vmatpush1.bf16.msra.mxu1 %v1664_v24 }
  0xc3   :  { %974 = vmatprep.subr.bf16.mxu0 %v1669_v25  ;;  %1015 = vmatprep.subr.bf16.mxu1 %v1672_v27 }
  0xc6   :  { %975 = vmatpush1.bf16.msra.mxu0 %v1667_v26  ;;  %1016 = vmatpush1.bf16.msra.mxu1 %v1670_v28 }
  0xc7   :  { %976 = vmatprep.subr.bf16.mxu0 %v1675_v29  ;;  %1017 = vmatprep.subr.bf16.mxu1 %v1678_v31 }
  0xca   :  { %977 = vmatpush1.bf16.msra.mxu0 %v1673_v30  ;;  %1018 = vmatpush1.bf16.msra.mxu1 %v1676_v32  ;;  %v699_v30 = vsub.s32 3, %v2150_v16 }
  0xcb   :  { %978 = vmatprep.subr.bf16.mxu0 %v1681_v33  ;;  %1019 = vmatprep.subr.bf16.mxu1 %v1684_v35 }
  0xce   :  { %979 = vmatpush1.bf16.msra.mxu0 %v1679_v34  ;;  %1020 = vmatpush1.bf16.msra.mxu1 %v1682_v36 }
  0xcf   :  { %1206 = vmatprep.subr.bf16.mxu0 %v1687_v39  ;;  %1247 = vmatprep.subr.bf16.mxu1 %v1690_v40  ;;  %v700_v39 = vrot.slane %v683_v18, %v699_v30  ;;  %v695_v40 = vsub.s32 2, %v2150_v16 }
  0xd1   :  { %997 = vmatmul.mubr.bf16.vlgmr.msra.gmra.mrb[8].mxu0 %v771_v38  ;;  %1038 = vmatmul.mubr.bf16.vlgmr.msra.gmra.mrb[8].mxu1 %v771_v38 }
  0xd2   :  { %1238 = vmatprep.mubr.bf16.mxu0 %v1985_v0  ;;  %1207 = vmatpush1.bf16.msra.mxu0 %v1685_v41 }
  0xd3   :  { %1248 = vmatpush1.bf16.msra.mxu1 %v1688_v42  ;;  %1279 = vmatprep.mubr.bf16.mxu1 %v1985_v0  ;;  %v1711_v0 = vld [vmem:[#allocation10 + $0x84] ss:$16 sps:$4 sm:$0xff]   ;;  %v696_v42 = vrot.slane %v683_v18, %v695_v40 }
  0xd4   :  { %1208 = vmatprep.subr.bf16.mxu0 %v1693_v43  ;;  %1249 = vmatprep.subr.bf16.mxu1 %v1696_v44 }
  0xd6   :  { %1209 = vmatpush1.bf16.msra.mxu0 %v1691_v45 }
  0xd7   :  { %1250 = vmatpush1.bf16.msra.mxu1 %v1694_v46  ;;  %1210 = vmatprep.subr.bf16.mxu0 %v1699_v47 }
  0xd8   :  { %1251 = vmatprep.subr.bf16.mxu1 %v1702_v48 }
  0xda   :  { %1211 = vmatpush1.bf16.msra.mxu0 %v1697_v49 }
  0xdb   :  { %1252 = vmatpush1.bf16.msra.mxu1 %v1700_v50  ;;  %1212 = vmatprep.subr.bf16.mxu0 %v1705_v51  ;;  %v128_v51 = vld [vmem:[#allocation5] sm:$0xff] }
  0xdc   :  { %1253 = vmatprep.subr.bf16.mxu1 %v1708_v52 }
  0xde   :  { %1213 = vmatpush1.bf16.msra.mxu0 %v1703_v53 }
  0xdf   :  { %1254 = vmatpush1.bf16.msra.mxu1 %v1706_v54  ;;  %1214 = vmatprep.subr.bf16.mxu0 %v1711_v0 }
  0xe0   :  { %1255 = vmatprep.subr.bf16.mxu1 %v1714_v55 }
  0xe2   :  { %1215 = vmatpush1.bf16.msra.mxu0 %v1709_v56 }
  0xe3   :  { %1256 = vmatpush1.bf16.msra.mxu1 %v1712_v57  ;;  %1216 = vmatprep.subr.bf16.mxu0 %v1717_v58 }
  0xe4   :  { %1257 = vmatprep.subr.bf16.mxu1 %v1720_v60 }
  0xe6   :  { %1217 = vmatpush1.bf16.msra.mxu0 %v1715_v59 }
  0xe7   :  { %1258 = vmatpush1.bf16.msra.mxu1 %v1718_v61  ;;  %1218 = vmatprep.subr.bf16.mxu0 %v1723_v62 }
  0xe8   :  { %1259 = vmatprep.subr.bf16.mxu1 %v1726_v63 }
  0xea   :  { %1219 = vmatpush1.bf16.msra.mxu0 %v1721_v1 }
  0xeb   :  { %1260 = vmatpush1.bf16.msra.mxu1 %v1724_v2  ;;  %1220 = vmatprep.subr.bf16.mxu0 %v1729_v3 }
  0xec   :  { %1261 = vmatprep.subr.bf16.mxu1 %v1732_v4 }
  0xee   :  { %1221 = vmatpush1.bf16.msra.mxu0 %v1727_v5 }
  0xef   :  { %1262 = vmatpush1.bf16.msra.mxu1 %v1730_v6  ;;  %v1288_v6 = vld [vmem:[%s2242_s8] sm:$0xf]  ;;  %s1986_s8 = smov [#allocation14]  }
  0xf0   :  { %s1359_s13 = sshll.u32 %s1986_s8, 4  ;;  %s1360_s13 = int_to_ptr.vmem [resolvable:$true] %s1359_s13 }
  0xf1   :  { %s1897_s3 = scalar_lea.vmem %s1360_s13, 256  ;;  %p1902_p7 = scmp.lt.s32.totalorder %s1360_s13, %s1360_s13 }
  0xf2   :  { %p1898_p6 = scmp.ne.s32.totalorder %s1360_s13, %s1897_s3  ;;  %p1903_p8 = scmp.lt.s32.totalorder %s1897_s3, %s1897_s3 }
  0xf4   :  { %p1904_p9 = por %p1903_p8, %p1902_p7 }
  0xf6   :  { %p1905_p10 = pnand %p1904_p9, %p1898_p6 }
 0x163   :  { %v393_v7 = vpop.f32.mrb[0].mxu0  ;;  %v434_v8 = vpop.f32.mrb[0].mxu1 }
 0x164   :  { %v395_v9 = vpop.f32.mrb[1].mxu0  ;;  %v436_v10 = vpop.f32.mrb[1].mxu1 }
 0x165   :  { %v397_v11 = vpop.f32.mrb[2].mxu0  ;;  %v438_v12 = vpop.f32.mrb[2].mxu1 }
 0x166   :  { %v398_v13 = vpop.f32.mrb[3].mxu0  ;;  %v439_v14 = vpop.f32.mrb[3].mxu1 }
 0x183   :  { %v635_v21 = vpop.f32.mrb[4].mxu0  ;;  %v676_v22 = vpop.f32.mrb[4].mxu1 }
 0x184   :  { %v636_v24 = vadd.f32 %v635_v21, %v393_v7  ;;  %v677_v25 = vadd.f32 %v676_v22, %v434_v8  ;;  %v637_v26 = vpop.f32.mrb[5].mxu0  ;;  %v678_v27 = vpop.f32.mrb[5].mxu1  ;;  %v1293_v7 = vrot.slane %v1288_v6, %v687_v17  ;;  %v1305_v17 = vrot.slane %v1288_v6, %v699_v30 }
 0x185   :  { %v638_v28 = vadd.f32 %v637_v26, %v395_v9  ;;  %v679_v29 = vadd.f32 %v678_v27, %v436_v10  ;;  %v639_v31 = vpop.f32.mrb[6].mxu0  ;;  %v680_v32 = vpop.f32.mrb[6].mxu1  ;;  %v1297_v10 = vrot.slane %v1288_v6, %v691_v19 }
 0x186   :  { %v705_v33 = vadd.f32 %v688_v20, %v636_v24  ;;  %v640_v34 = vpop.f32.mrb[7].mxu0  ;;  %v681_v35 = vpop.f32.mrb[7].mxu1  ;;  %v707_v44 = vadd.f32 %v696_v42, %v677_v25 }
 0x187   :  { %v706_v36 = vadd.f32 %v692_v23, %v638_v28  ;;  %v708_v41 = vadd.f32 %v700_v39, %v679_v29  ;;  %v1301_v28 = vrot.slane %v1288_v6, %v695_v40 }
 0x188   :  { %v1457_v37 = vmul.f32 -1.442695, %v705_v33 }
 0x189   :  { %v1458_v38 = vmul.f32 -1.442695, %v706_v36  ;;  %v1459_v43 = vmul.f32 -1.442695, %v708_v41 }
 0x18a   :  { %1733 = vpow2.f32 %v1457_v37 }
 0x18b   :  { %1735 = vpow2.f32 %v1458_v38  ;;  %v129_v38 = vld [vmem:[#allocation5 + $0x8] sm:$0xff] }
 0x18c   :  { %1737 = vpow2.f32 %v1459_v43 }
 0x18d   :  { %1739 = vtanh.f32 %v707_v44 }
 0x194   :  { %v1734_v45 = vpop.eup %1733 }
 0x195   :  { %v1736_v46 = vpop.eup %1735  ;;  %v712_v47 = vadd.f32 1.0, %v1734_v45 }
 0x196   :  { %v718_v48 = vadd.f32 1.0, %v1736_v46  ;;  %v1738_v49 = vpop.eup %1737 }
 0x197   :  { %1741 = vrcp.f32 %v712_v47  ;;  %v1740_v50 = vpop.eup %1739  ;;  %v725_v0 = vadd.f32 1.0, %v1738_v49 }
 0x198   :  { %1743 = vrcp.f32 %v718_v48 }
 0x199   :  { %1745 = vrcp.f32 %v725_v0 }
 0x1a1   :  { %v1742_v52 = vpop.eup %1741 }
 0x1a2   :  { %v1744_v53 = vpop.eup %1743  ;;  %v730_v54 = vmul.f32 %v1742_v52, %v1740_v50 }
 0x1a3   :  { %v729_v55 = vmul.f32 %v1744_v53, %v128_v51  ;;  %v1746_v57 = vpop.eup %1745 }
 0x1a4   :  { %v998_v61 = vpop.f32.mrb[8].mxu0  ;;  %v1039_v2 = vpop.f32.mrb[8].mxu1 }
 0x1a5   :  { %v731_v56 = vadd.f32 %v730_v54, %v729_v55  ;;  %v1000_v62 = vpop.f32.mrb[9].mxu0  ;;  %v1041_v3 = vpop.f32.mrb[9].mxu1 }
 0x1a6   :  { %v1002_v63 = vpop.f32.mrb[10].mxu0  ;;  %v1043_v4 = vpop.f32.mrb[10].mxu1 }
 0x1a7   :  { %735 = vst [vmem:[#allocation16] sm:$0xff] %v731_v56  ;;  %1747 = vtanh.f32 %v731_v56  ;;  %v1003_v1 = vpop.f32.mrb[11].mxu0  ;;  %v1044_v5 = vpop.f32.mrb[11].mxu1 }
 0x1b1   :  { %v1748_v58 = vpop.eup %1747 }
 0x1b2   :  { %v733_v59 = vmul.f32 %v1748_v58, %v1746_v57 }
 0x1b4   :  { %v736_v60 = vpack.c.bf16 %v733_v59, %v733_v59  ;;  %734 = vst [vmem:[#allocation14] sm:$0xff] %v733_v59 }
 0x1b6   :  { %1239 = vmatmul.mubr.bf16.vlgmr.msra.gmra.mrb[12].mxu0 %v736_v60  ;;  %1280 = vmatmul.mubr.bf16.vlgmr.msra.gmra.mrb[12].mxu1 %v736_v60 }
 0x289   :  { %v1240_v8 = vpop.f32.mrb[12].mxu0  ;;  %v1281_v9 = vpop.f32.mrb[12].mxu1 }
 0x28a   :  { %v1241_v11 = vadd.f32 %v1240_v8, %v998_v61  ;;  %v1282_v12 = vadd.f32 %v1281_v9, %v1039_v2  ;;  %v1242_v13 = vpop.f32.mrb[13].mxu0  ;;  %v1283_v14 = vpop.f32.mrb[13].mxu1 }
 0x28b   :  { %v1243_v15 = vadd.f32 %v1242_v13, %v1000_v62  ;;  %v1284_v18 = vadd.f32 %v1283_v14, %v1041_v3  ;;  %v1244_v20 = vpop.f32.mrb[14].mxu0  ;;  %v1285_v21 = vpop.f32.mrb[14].mxu1 }
 0x28c   :  { %v1310_v22 = vadd.f32 %v1293_v7, %v1241_v11  ;;  %v1245_v23 = vpop.f32.mrb[15].mxu0  ;;  %v1286_v24 = vpop.f32.mrb[15].mxu1  ;;  %v1312_v31 = vadd.f32 %v1301_v28, %v1282_v12 }
 0x28d   :  { %v1311_v25 = vadd.f32 %v1297_v10, %v1243_v15  ;;  %v1313_v19 = vadd.f32 %v1305_v17, %v1284_v18 }
 0x28e   :  { %v1524_v26 = vmul.f32 -1.442695, %v1310_v22 }
 0x28f   :  { %v1525_v27 = vmul.f32 -1.442695, %v1311_v25  ;;  %v1526_v29 = vmul.f32 -1.442695, %v1313_v19 }
 0x290   :  { %1749 = vpow2.f32 %v1524_v26 }
 0x291   :  { %1751 = vpow2.f32 %v1525_v27 }
 0x292   :  { %1753 = vpow2.f32 %v1526_v29 }
 0x293   :  { %1755 = vtanh.f32 %v1312_v31 }
 0x29a   :  { %v1750_v32 = vpop.eup %1749 }
 0x29b   :  { %v1752_v33 = vpop.eup %1751  ;;  %v1317_v34 = vadd.f32 1.0, %v1750_v32 }
 0x29c   :  { %v1323_v35 = vadd.f32 1.0, %v1752_v33  ;;  %v1754_v36 = vpop.eup %1753 }
 0x29d   :  { %1757 = vrcp.f32 %v1317_v34  ;;  %v1756_v37 = vpop.eup %1755  ;;  %v1330_v42 = vadd.f32 1.0, %v1754_v36 }
 0x29e   :  { %1759 = vrcp.f32 %v1323_v35 }
 0x29f   :  { %1761 = vrcp.f32 %v1330_v42 }
 0x2a7   :  { %v1758_v30 = vpop.eup %1757 }
 0x2a8   :  { %v1760_v39 = vpop.eup %1759  ;;  %v1336_v41 = vmul.f32 %v1758_v30, %v1756_v37 }
 0x2a9   :  { %v1335_v43 = vmul.f32 %v1760_v39, %v129_v38  ;;  %v1762_v40 = vpop.eup %1761 }
 0x2ab   :  { %v1337_v16 = vadd.f32 %v1336_v41, %v1335_v43 }
 0x2ad   :  { %1763 = vtanh.f32 %v1337_v16  ;;  %1341 = vst [vmem:[#allocation16 + $0x8] sm:$0xff] %v1337_v16 }
 0x2b7   :  { %v1764_v44 = vpop.eup %1763 }
 0x2b8   :  { %v1339_v45 = vmul.f32 %v1764_v44, %v1762_v40 }
 0x2ba   :  { %1340 = vst [vmem:[#allocation14 + $0x8] sm:$0xff] %v1339_v45  ;;  %v1342_v46 = vpack.c.bf16 %v1339_v45, %v1339_v45 }
 0x2bb   :  { %1908 = shalt.err (!%p1905_p10)
}
 0x2bc   :  { %s1909_s30 = scalar_lea.hbm %s2244_s10, 256 }
 0x2bd   :  { %p1910_p11 = scmp.ne.s32.totalorder %s2244_s10, %s1909_s30  ;;  %p1913_p12 = scmp.lt.u32.totalorder %s1909_s30, %s2244_s10 }
 0x2bf   :  { %p1915_p13 = pnand %p1913_p12, %p1910_p11 }
 0x2c1   :  { %1918 = shalt.err (!%p1915_p13)
}
 0x2c2   :  { %1365 = dma.vmem_to_hbm [thread:$0]  %s1360_s13, 256, %s2244_s10, [#allocation15], %s1976_s27, %s1976_s27, %s1977_s28   ;;  %1343 = vst [vmem:[#allocation13] sm:$0xf] %v1342_v46 }
 0x2c3   :  { %s1919_s19 = scalar_lea.vmem %s2178_s23, 256  ;;  %p1924_p1 = scmp.lt.s32.totalorder %s2178_s23, %s2178_s23 }
 0x2c4   :  { %p1920_p0 = scmp.ne.s32.totalorder %s2178_s23, %s1919_s19  ;;  %p1925_p2 = scmp.lt.s32.totalorder %s1919_s19, %s1919_s19 }
 0x2c6   :  { %p1926_p3 = por %p1925_p2, %p1924_p1 }
 0x2c8   :  { %p1927_p4 = pnand %p1926_p3, %p1920_p0 }
 0x2ca   :  { %1930 = shalt.err (!%p1927_p4)
}
 0x2cb   :  { %s1931_s2 = scalar_lea.hbm %s2245_s11, 256 }
 0x2cc   :  { %p1932_p5 = scmp.ne.s32.totalorder %s2245_s11, %s1931_s2  ;;  %p1935_p6 = scmp.lt.u32.totalorder %s1931_s2, %s2245_s11 }
 0x2ce   :  { %p1937_p7 = pnand %p1935_p6, %p1932_p5 }
 0x2d0   :  { %1940 = shalt.err (!%p1937_p7)
}
 0x2d1   :  { %1377 = dma.vmem_to_hbm [thread:$0]  %s2178_s23, 256, %s2245_s11, [#allocation15], %s1976_s27, %s1976_s27, %s1977_s28  }
 0x2d2   :  { %s1941_s4 = scalar_lea.vmem %s2180_s26, 64  ;;  %p1946_p9 = scmp.lt.s32.totalorder %s2180_s26, %s2180_s26 }
 0x2d3   :  { %p1942_p8 = scmp.ne.s32.totalorder %s2180_s26, %s1941_s4  ;;  %p1947_p10 = scmp.lt.s32.totalorder %s1941_s4, %s1941_s4 }
 0x2d5   :  { %p1948_p11 = por %p1947_p10, %p1946_p9 }
 0x2d7   :  { %p1949_p12 = pnand %p1948_p11, %p1942_p8 }
 0x2d9   :  { %1952 = shalt.err (!%p1949_p12)
}
 0x2da   :  { %s1953_s21 = scalar_lea.hbm %s2243_s9, 64 }
 0x2db   :  { %p1954_p13 = scmp.ne.s32.totalorder %s2243_s9, %s1953_s21  ;;  %p1957_p0 = scmp.lt.u32.totalorder %s1953_s21, %s2243_s9 }
 0x2dd   :  { %p1959_p1 = pnand %p1957_p0, %p1954_p13 }
 0x2df   :  { %1962 = shalt.err (!%p1959_p1)
}
 0x2e0   :  { %1353 = dma.vmem_to_hbm [thread:$0]  %s2180_s26, 64, %s2243_s9, [#allocation4]  }
 0x2e1   :  { %1971 = dma.done.wait [#allocation4], 64  }
 0x2e2   :  { %1972 = vsyncadd [#allocation4], 4294967232 }
 0x2e3   :  { %1973 = dma.done.wait [#allocation15], 512  }
 0x2e4   :  { %1974 = vsyncadd [#allocation15], 4294966784 }
 0x2e5   :  { %1387 = vsyncpa [#allocation3], 1 }
 0x2e6   :  { %1388 = vsyncpa [#allocation6], 1 }
 0x2e7   :  { %1389 = vsyncpa [#allocation9], 1 }
 0x2e8   :  { %1390 = vsyncpa [#allocation12], 1 }
 0x2e9   :  { %1391 = vsyncpa [#allocation4], 1 }
 0x2ea   :  { %1392 = vsyncpa [#allocation15], 1 }

</bundles_post_ra>
